<compile_context>
chip_gen: v7x
topology: tpu7x:2x2x1
jax: 0.10.0
libtpu: 0.0.40
codegen_flags: <defaults>
</compile_context>

<pallas_src>
import functools

import jax
import jax.numpy as jnp
from jax.experimental import pallas as pl
from jax.experimental.pallas import tpu as pltpu

NEG_SLOPE = 0.01  # nn.LeakyReLU() default negative_slope


def _leaky_relu(x):
    return jnp.where(x > 0, x, NEG_SLOPE * x)


def _round_up(x, m):
    return ((x + m - 1) // m) * m


def disc_zz_kernel(z_ref, z2_ref, w1a_ref, w1b_ref, b1_ref,
                   w2_ref, b2_ref, w3t_ref, b3_ref, out_ref):
    cd = w1a_ref.dtype  # compute dtype for MXU operands = (pre-cast) weight dtype

    # fc1: two dots into one f32 accumulator (split-w1 replaces the torch.cat).
    # Activations are cast to `cd` only here, at the dot operands.
    h1 = (jnp.dot(z_ref[...].astype(cd), w1a_ref[...],
                  preferred_element_type=jnp.float32)
          + jnp.dot(z2_ref[...].astype(cd), w1b_ref[...],
                    preferred_element_type=jnp.float32)
          + b1_ref[...])
    h1 = _leaky_relu(h1)                       # f32 on VPU; dropout = identity (eval)

    # fc2 + LeakyReLU
    h2 = jnp.dot(h1.astype(cd), w2_ref[...],
                 preferred_element_type=jnp.float32) + b2_ref[...]
    h2 = _leaky_relu(h2)

    # fc3: single output column -> VPU multiply + lane reduction (no N=1 MXU matmul)
    prod = (h2.astype(cd) * w3t_ref[...]).astype(jnp.float32)
    h3 = jnp.sum(prod, axis=-1, keepdims=True) + b3_ref[...]
    out_ref[...] = h3.astype(out_ref.dtype)


def _choose_block_b(B):
    # B < 512 : a single step (small inference path; fixed overhead dominates anyway).
    # B >= 512: at least 2 grid steps so ("parallel",) shards across v7x's two
    #           TensorCores; cap at 2048 rows (plateau of the measured mem-bound
    #           tiling curve on v6e, and VMEM-safe on v5e).
    if B < 512:
        return _round_up(max(B, 8), 8)
    return min(2048, _round_up(pl.cdiv(B, 2), 8))


@functools.partial(jax.jit, static_argnames=("block_b",))
def discriminator_zz(z, z_, prepared_params, *, block_b=None):
    """Pallas forward pass.

    z, z_           : (B, latent_dim) activations, streamed as-is from HBM.
    prepared_params : output of prepare_params() (weights pre-split / pre-cast).
    Returns (B, 1) float32.
    """
    w1a, w1b, b1, w2, b2, w3t, b3 = prepared_params
    B, ld = z.shape

    TB = _round_up(block_b, 8) if block_b is not None else _choose_block_b(B)
    grid = (pl.cdiv(B, TB),)      # partial last block instead of padding the inputs

    tile_spec = lambda shape: pl.BlockSpec(shape, lambda i: (i, 0))   # batch-tiled
    const_spec = lambda shape: pl.BlockSpec(shape, lambda i: (0, 0))  # VMEM-resident

    h1d, h2d = w2.shape  # 64, 32
    flops = 2 * B * (2 * ld * h1d + h1d * h2d + h2d)
    bytes_accessed = (2 * B * ld * z.dtype.itemsize                         # inputs
                      + (2 * ld * h1d + h1d * h2d + h2d) * w2.dtype.itemsize  # weights
                      + (h1d + h2d + 1) * 4                                 # biases
                      + B * 4)                                              # output

    return pl.pallas_call(
        disc_zz_kernel,
        out_shape=jax.ShapeDtypeStruct((B, 1), jnp.float32),
        grid=grid,
        in_specs=[
            tile_spec((TB, ld)), tile_spec((TB, ld)),
            const_spec(w1a.shape), const_spec(w1b.shape), const_spec(b1.shape),
            const_spec(w2.shape), const_spec(b2.shape),
            const_spec(w3t.shape), const_spec(b3.shape),
        ],
        out_specs=tile_spec((TB, 1)),
        compiler_params=pltpu.CompilerParams(dimension_semantics=("parallel",)),
        cost_estimate=pl.CostEstimate(flops=flops, transcendentals=0,
                                      bytes_accessed=bytes_accessed),
    )(z, z_, w1a, w1b, b1, w2, b2, w3t, b3)


def prepare_params(params, latent_dim, compute_dtype=jnp.float32):
    """One-time host-side prep: split fc1 weight into the z / z_ halves (removes the
    in-kernel concat) and cast weights to the MXU compute dtype; biases stay f32.
    fc3 weight is stored as a (1, 32) row for the VPU broadcast-multiply."""
    w1, b1, w2, b2, w3, b3 = params
    cd = jnp.dtype(compute_dtype)
    return (w1[:latent_dim].astype(cd), w1[latent_dim:].astype(cd),
            b1.astype(jnp.float32),
            w2.astype(cd), b2.astype(jnp.float32),
            w3.T.astype(cd), b3.astype(jnp.float32))


def init_params(key, latent_dim):
    """Deterministic init mimicking nn.Linear default (uniform +-1/sqrt(fan_in)).
    Weights are stored transposed w.r.t. PyTorch, i.e. (in_features, out_features)."""
    dims = [(2 * latent_dim, 64), (64, 32), (32, 1)]
    params = []
    for i, (fin, fout) in enumerate(dims):
        kw, kb = jax.random.split(jax.random.fold_in(key, i))
        bound = 1.0 / (fin ** 0.5)
        w = jax.random.uniform(kw, (fin, fout), jnp.float32, -bound, bound)
        b = jax.random.uniform(kb, (1, fout), jnp.float32, -bound, bound)
        params += [w, b]
    return tuple(params)


def reference_forward(z, z_, params, compute_dtype=jnp.float32):
    """Plain-JAX reference (same operand dtypes as the kernel path)."""
    w1, b1, w2, b2, w3, b3 = params
    cd = jnp.dtype(compute_dtype)
    zz = jnp.concatenate([z.astype(cd), z_.astype(cd)], axis=1)
    h = _leaky_relu(jnp.dot(zz, w1.astype(cd),
                            preferred_element_type=jnp.float32) + b1)
    h = _leaky_relu(jnp.dot(h.astype(cd), w2.astype(cd),
                            preferred_element_type=jnp.float32) + b2)
    return jnp.dot(h.astype(cd), w3.astype(cd),
                   preferred_element_type=jnp.float32) + b3


if __name__ == "__main__":
    latent_dim = 100
    batch = 8

    key = jax.random.PRNGKey(0)
    kz, kz_, kp = jax.random.split(key, 3)
    z = jax.random.normal(kz, (batch, latent_dim), jnp.float32)
    z_ = jax.random.normal(kz_, (batch, latent_dim), jnp.float32)
    params = init_params(kp, latent_dim)

    # f32 path (strict check)
    prep_f32 = prepare_params(params, latent_dim)
    out = jax.block_until_ready(discriminator_zz(z, z_, prep_f32))
    ref = reference_forward(z, z_, params)
    assert out.shape == (batch, 1), out.shape
    assert jnp.allclose(out, ref, atol=1e-5, rtol=1e-5), "f32 mismatch vs reference"

    # bf16-weight path: activations stay f32 in HBM, cast in-kernel at the dot operands
    prep_bf16 = prepare_params(params, latent_dim, jnp.bfloat16)
    out_bf = jax.block_until_ready(discriminator_zz(z, z_, prep_bf16))
    ref_bf = reference_forward(z, z_, params, compute_dtype=jnp.bfloat16)
    assert jnp.allclose(out_bf, ref_bf, atol=2e-2, rtol=2e-2), "bf16 mismatch vs reference"

    # multi-step grid with a partial final block (no jnp.pad): B=300, TB=128 -> 3 steps
    B2 = 300
    kz2, kz2_ = jax.random.split(jax.random.fold_in(key, 7))
    z2 = jax.random.normal(kz2, (B2, latent_dim), jnp.float32)
    z2_ = jax.random.normal(kz2_, (B2, latent_dim), jnp.float32)
    out2 = jax.block_until_ready(discriminator_zz(z2, z2_, prep_f32, block_b=128))
    ref2 = reference_forward(z2, z2_, params)
    assert out2.shape == (B2, 1), out2.shape
    assert jnp.allclose(out2, ref2, atol=1e-5, rtol=1e-5), "gridded mismatch vs reference"

    # default tile heuristic for a larger batch (>=2 grid steps, partial last block)
    B3 = 1000
    kz3, kz3_ = jax.random.split(jax.random.fold_in(key, 11))
    z3 = jax.random.normal(kz3, (B3, latent_dim), jnp.float32)
    z3_ = jax.random.normal(kz3_, (B3, latent_dim), jnp.float32)
    out3 = jax.block_until_ready(discriminator_zz(z3, z3_, prep_f32))
    ref3 = reference_forward(z3, z3_, params)
    assert out3.shape == (B3, 1), out3.shape
    assert jnp.allclose(out3, ref3, atol=1e-5, rtol=1e-5), "default-tile mismatch vs reference"

    print("KERNEL_OK")
</pallas_src>

<mosaic_0001>
module attributes {stable_mosaic.version = 11 : i64} {
  func.func @disc_zz_kernel(%arg0: i32, %arg1: memref<8x100xf32, #tpu.memory_space<vmem>>, %arg2: memref<8x100xf32, #tpu.memory_space<vmem>>, %arg3: memref<100x64xf32, #tpu.memory_space<vmem>>, %arg4: memref<100x64xf32, #tpu.memory_space<vmem>>, %arg5: memref<1x64xf32, #tpu.memory_space<vmem>>, %arg6: memref<64x32xf32, #tpu.memory_space<vmem>>, %arg7: memref<1x32xf32, #tpu.memory_space<vmem>>, %arg8: memref<1x32xf32, #tpu.memory_space<vmem>>, %arg9: memref<1x1xf32, #tpu.memory_space<vmem>>, %arg10: memref<8x1xf32, #tpu.memory_space<vmem>>) attributes {dimension_semantics = [#tpu.dimension_semantics<parallel>], iteration_bounds = array<i64: 1>, scalar_prefetch = 0 : i64, scratch_operands = 0 : i64, tpu.core_type = #tpu.core_type<tc>, window_params = [{transform_indices = @transform_0, window_bounds = array<i64: 8, 100>}, {transform_indices = @transform_1, window_bounds = array<i64: 8, 100>}, {pipeline_mode = #tpu.pipeline_mode<synchronous>, transform_indices = @transform_2, window_bounds = array<i64: 100, 64>}, {pipeline_mode = #tpu.pipeline_mode<synchronous>, transform_indices = @transform_3, window_bounds = array<i64: 100, 64>}, {pipeline_mode = #tpu.pipeline_mode<synchronous>, transform_indices = @transform_4, window_bounds = array<i64: 1, 64>}, {pipeline_mode = #tpu.pipeline_mode<synchronous>, transform_indices = @transform_5, window_bounds = array<i64: 64, 32>}, {pipeline_mode = #tpu.pipeline_mode<synchronous>, transform_indices = @transform_6, window_bounds = array<i64: 1, 32>}, {pipeline_mode = #tpu.pipeline_mode<synchronous>, transform_indices = @transform_7, window_bounds = array<i64: 1, 32>}, {pipeline_mode = #tpu.pipeline_mode<synchronous>, transform_indices = @transform_8, window_bounds = array<i64: 1, 1>}, {transform_indices = @transform_9, window_bounds = array<i64: 8, 1>}]} {
    %c0 = arith.constant 0 : index
    %c0_0 = arith.constant 0 : index
    %0 = vector.load %arg1[%c0, %c0_0] : memref<8x100xf32, #tpu.memory_space<vmem>>, vector<8x100xf32>
    %c0_1 = arith.constant 0 : index
    %c0_2 = arith.constant 0 : index
    %1 = vector.load %arg3[%c0_1, %c0_2] : memref<100x64xf32, #tpu.memory_space<vmem>>, vector<100x64xf32>
    %cst = arith.constant dense<0.000000e+00> : vector<8x64xf32>
    %2 = tpu.matmul %0, %1, %cst {dimension_numbers = #tpu.dot_dimension_numbers<[1], [0], [0], [1], [0, 0, 1, 1], [], []>} : vector<8x100xf32>, vector<100x64xf32>, vector<8x64xf32> -> vector<8x64xf32>
    %c0_3 = arith.constant 0 : index
    %c0_4 = arith.constant 0 : index
    %3 = vector.load %arg2[%c0_3, %c0_4] : memref<8x100xf32, #tpu.memory_space<vmem>>, vector<8x100xf32>
    %c0_5 = arith.constant 0 : index
    %c0_6 = arith.constant 0 : index
    %4 = vector.load %arg4[%c0_5, %c0_6] : memref<100x64xf32, #tpu.memory_space<vmem>>, vector<100x64xf32>
    %cst_7 = arith.constant dense<0.000000e+00> : vector<8x64xf32>
    %5 = tpu.matmul %3, %4, %cst_7 {dimension_numbers = #tpu.dot_dimension_numbers<[1], [0], [0], [1], [0, 0, 1, 1], [], []>} : vector<8x100xf32>, vector<100x64xf32>, vector<8x64xf32> -> vector<8x64xf32>
    %6 = arith.addf %2, %5 : vector<8x64xf32>
    %c0_8 = arith.constant 0 : index
    %c0_9 = arith.constant 0 : index
    %7 = vector.load %arg5[%c0_8, %c0_9] : memref<1x64xf32, #tpu.memory_space<vmem>>, vector<1x64xf32>
    %8 = vector.broadcast %7 : vector<1x64xf32> to vector<8x64xf32>
    %9 = arith.addf %6, %8 : vector<8x64xf32>
    %cst_10 = arith.constant 0.000000e+00 : f32
    %10 = vector.broadcast %cst_10 : f32 to vector<8x64xf32>
    %11 = arith.cmpf ogt, %9, %10 : vector<8x64xf32>
    %cst_11 = arith.constant 0.00999999977 : f32
    %12 = vector.broadcast %cst_11 : f32 to vector<8x64xf32>
    %13 = arith.mulf %12, %9 : vector<8x64xf32>
    %14 = arith.select %11, %9, %13 : vector<8x64xi1>, vector<8x64xf32>
    %c0_12 = arith.constant 0 : index
    %c0_13 = arith.constant 0 : index
    %15 = vector.load %arg6[%c0_12, %c0_13] : memref<64x32xf32, #tpu.memory_space<vmem>>, vector<64x32xf32>
    %cst_14 = arith.constant dense<0.000000e+00> : vector<8x32xf32>
    %16 = tpu.matmul %14, %15, %cst_14 {dimension_numbers = #tpu.dot_dimension_numbers<[1], [0], [0], [1], [0, 0, 1, 1], [], []>} : vector<8x64xf32>, vector<64x32xf32>, vector<8x32xf32> -> vector<8x32xf32>
    %c0_15 = arith.constant 0 : index
    %c0_16 = arith.constant 0 : index
    %17 = vector.load %arg7[%c0_15, %c0_16] : memref<1x32xf32, #tpu.memory_space<vmem>>, vector<1x32xf32>
    %18 = vector.broadcast %17 : vector<1x32xf32> to vector<8x32xf32>
    %19 = arith.addf %16, %18 : vector<8x32xf32>
    %cst_17 = arith.constant 0.000000e+00 : f32
    %20 = vector.broadcast %cst_17 : f32 to vector<8x32xf32>
    %21 = arith.cmpf ogt, %19, %20 : vector<8x32xf32>
    %cst_18 = arith.constant 0.00999999977 : f32
    %22 = vector.broadcast %cst_18 : f32 to vector<8x32xf32>
    %23 = arith.mulf %22, %19 : vector<8x32xf32>
    %24 = arith.select %21, %19, %23 : vector<8x32xi1>, vector<8x32xf32>
    %c0_19 = arith.constant 0 : index
    %c0_20 = arith.constant 0 : index
    %25 = vector.load %arg8[%c0_19, %c0_20] : memref<1x32xf32, #tpu.memory_space<vmem>>, vector<1x32xf32>
    %26 = vector.broadcast %25 : vector<1x32xf32> to vector<8x32xf32>
    %27 = arith.mulf %24, %26 : vector<8x32xf32>
    %cst_21 = arith.constant dense<0.000000e+00> : vector<8xf32>
    %28 = vector.multi_reduction <add>, %27, %cst_21 [1] : vector<8x32xf32> to vector<8xf32>
    %29 = vector.shape_cast %28 : vector<8xf32> to vector<8x1xf32>
    %c0_22 = arith.constant 0 : index
    %c0_23 = arith.constant 0 : index
    %30 = vector.load %arg9[%c0_22, %c0_23] : memref<1x1xf32, #tpu.memory_space<vmem>>, vector<1x1xf32>
    %31 = vector.broadcast %30 : vector<1x1xf32> to vector<8x1xf32>
    %32 = arith.addf %29, %31 : vector<8x1xf32>
    %c0_24 = arith.constant 0 : index
    %c0_25 = arith.constant 0 : index
    %33 = vector.load %arg10[%c0_24, %c0_25] : memref<8x1xf32, #tpu.memory_space<vmem>>, vector<8x1xf32>
    tpu.vector_store %arg10[%c0_24, %c0_25], %32 {strides = array<i32>} : memref<8x1xf32, #tpu.memory_space<vmem>>, vector<8x1xf32>,
    return
  }
  func.func @transform_0(%arg0: i32) -> (i32, i32) {
    %c0_i32 = arith.constant 0 : i32
    %c0_i32_0 = arith.constant 0 : i32
    return %arg0, %c0_i32 : i32, i32
  }
  func.func @transform_1(%arg0: i32) -> (i32, i32) {
    %c0_i32 = arith.constant 0 : i32
    %c0_i32_0 = arith.constant 0 : i32
    return %arg0, %c0_i32 : i32, i32
  }
  func.func @transform_2(%arg0: i32) -> (i32, i32) {
    %c0_i32 = arith.constant 0 : i32
    %c0_i32_0 = arith.constant 0 : i32
    %c0_i32_1 = arith.constant 0 : i32
    return %c0_i32, %c0_i32_0 : i32, i32
  }
  func.func @transform_3(%arg0: i32) -> (i32, i32) {
    %c0_i32 = arith.constant 0 : i32
    %c0_i32_0 = arith.constant 0 : i32
    %c0_i32_1 = arith.constant 0 : i32
    return %c0_i32, %c0_i32_0 : i32, i32
  }
  func.func @transform_4(%arg0: i32) -> (i32, i32) {
    %c0_i32 = arith.constant 0 : i32
    %c0_i32_0 = arith.constant 0 : i32
    %c0_i32_1 = arith.constant 0 : i32
    return %c0_i32, %c0_i32_0 : i32, i32
  }
  func.func @transform_5(%arg0: i32) -> (i32, i32) {
    %c0_i32 = arith.constant 0 : i32
    %c0_i32_0 = arith.constant 0 : i32
    %c0_i32_1 = arith.constant 0 : i32
    return %c0_i32, %c0_i32_0 : i32, i32
  }
  func.func @transform_6(%arg0: i32) -> (i32, i32) {
    %c0_i32 = arith.constant 0 : i32
    %c0_i32_0 = arith.constant 0 : i32
    %c0_i32_1 = arith.constant 0 : i32
    return %c0_i32, %c0_i32_0 : i32, i32
  }
  func.func @transform_7(%arg0: i32) -> (i32, i32) {
    %c0_i32 = arith.constant 0 : i32
    %c0_i32_0 = arith.constant 0 : i32
    %c0_i32_1 = arith.constant 0 : i32
    return %c0_i32, %c0_i32_0 : i32, i32
  }
  func.func @transform_8(%arg0: i32) -> (i32, i32) {
    %c0_i32 = arith.constant 0 : i32
    %c0_i32_0 = arith.constant 0 : i32
    %c0_i32_1 = arith.constant 0 : i32
    return %c0_i32, %c0_i32_0 : i32, i32
  }
  func.func @transform_9(%arg0: i32) -> (i32, i32) {
    %c0_i32 = arith.constant 0 : i32
    %c0_i32_0 = arith.constant 0 : i32
    return %arg0, %c0_i32 : i32, i32
  }
}

</mosaic_0001>

<bundles_post_ra>
// kernel: discriminator_zz.1
= control target key start
LH: loop header
LB: loop body
LE: loop exit
PB: predicated region body
PF: predicated region fallthrough
CT: control target
= control target key end

     0   :  { %v519_v0 = vmov 0.0|0.0   ;;  %vm520_vm0 = vmmov 0   ;;  %v521_v8 = vmov 0.0   ;;  %vm66_vm1 = vcmask 1043456   ;;  %s719_s3 = inlined_call_operand.vmem [shape: f32[100,64], index: 3, kind: input, shape index: {}]   ;;  %s720_s2 = inlined_call_operand.vmem [shape: f32[100,64], index: 2, kind: input, shape index: {}]   ;;  %s721_s5 = inlined_call_operand.vmem [shape: f32[64,32], index: 5, kind: input, shape index: {}]   ;;  %s722_s1 = inlined_call_operand.vmem [shape: f32[8,100], index: 1, kind: input, shape index: {}]   ;;  %s723_s0 = inlined_call_operand.vmem [shape: f32[8,100], index: 0, kind: input, shape index: {}]   ;;  %s724_s4 = inlined_call_operand.vmem [shape: f32[1,64], index: 4, kind: input, shape index: {}]   ;;  %s725_s8 = inlined_call_operand.<no memory space> [shape: f32[1,1], index: 8, kind: input, shape index: {}]   ;;  %s726_s6 = inlined_call_operand.vmem [shape: f32[1,32], index: 6, kind: input, shape index: {}]   ;;  %s727_s7 = inlined_call_operand.vmem [shape: f32[1,32], index: 7, kind: input, shape index: {}]   ;;  %s728_s9 = inlined_call_operand.vmem [shape: f32[8,1], index: 9, kind: output, shape index: {}]  }
   0x1   :  { %468 = vmatprep.subr.bf16.mxu0 %v519_v0  ;;  %486 = vmatprep.subr.bf16.mxu1 %v519_v0  ;;  %v49_v1 = vld [vmem:[%s719_s3] sm:$0xff]  ;;  %v50_v2 = vld [vmem:[%s719_s3 + $0x8] sm:$0xff]  ;;  %v51_v6 = vld [vmem:[%s719_s3 + $0x10] sm:$0xff]  ;;  %vm62_vm2 = vcmask 818176   ;;  %vm242_vm4 = vcmask 523264   ;;  %v14_v63 = vstv %s725_s8  ;;  %vm327_vm6 = vcmask 261120  }
   0x2   :  { %v35_v3 = vld [vmem:[%s720_s2] sm:$0xff]  ;;  %v469_v4 = vpack.c.bf16 %v50_v2, %v49_v1  ;;  %v36_v5 = vld [vmem:[%s720_s2 + $0x8] sm:$0xff]  ;;  %v52_v7 = vld [vmem:[%s719_s3 + $0x18] sm:$0xff]  ;;  %417 = vmatprep.mubr.msk.f32.mxu0 %vm520_vm0, %v521_v8  ;;  %446 = vmatprep.mubr.msk.f32.mxu1 %vm520_vm0, %v521_v8  ;;  %15 = vst [vmem:[#allocation2] sm:$0x1] %v14_v63  ;;  %vm339_vm7 = vcmask 7168  }
   0x3   :  { %v487_v9 = vpack.c.bf16 %v36_v5, %v35_v3  ;;  %v37_v10 = vld [vmem:[%s720_s2 + $0x10] sm:$0xff]  ;;  %v38_v11 = vld [vmem:[%s720_s2 + $0x18] sm:$0xff]  ;;  %v472_v12 = vpack.c.bf16 %v52_v7, %v51_v6  ;;  %v53_v14 = vld [vmem:[%s719_s3 + $0x20] sm:$0xff] }
   0x4   :  { %470 = vmatpush3.bf16.msra.mxu0 %v469_v4  ;;  %v490_v13 = vpack.c.bf16 %v38_v11, %v37_v10  ;;  %v54_v15 = vld [vmem:[%s719_s3 + $0x28] sm:$0xff]  ;;  %v39_v16 = vld [vmem:[%s720_s2 + $0x20] sm:$0xff]  ;;  %v55_v20 = vld [vmem:[%s719_s3 + $0x30] sm:$0xff] }
   0x5   :  { %488 = vmatpush3.bf16.msra.mxu1 %v487_v9  ;;  %471 = vmatprep.subr.bf16.mxu0 %v519_v0  ;;  %v40_v17 = vld [vmem:[%s720_s2 + $0x28] sm:$0xff]  ;;  %v475_v18 = vpack.c.bf16 %v54_v15, %v53_v14  ;;  %v56_v21 = vld [vmem:[%s719_s3 + $0x38] sm:$0xff]  ;;  %v41_v22 = vld [vmem:[%s720_s2 + $0x30] sm:$0xff] }
   0x6   :  { %489 = vmatprep.subr.bf16.mxu1 %v519_v0  ;;  %v493_v19 = vpack.c.bf16 %v40_v17, %v39_v16  ;;  %v42_v23 = vld [vmem:[%s720_s2 + $0x38] sm:$0xff]  ;;  %v478_v24 = vpack.c.bf16 %v56_v21, %v55_v20  ;;  %v57_v26 = vld [vmem:[%s719_s3 + $0x40] sm:$0xff]  ;;  %v58_v27 = vld [vmem:[%s719_s3 + $0x48] sm:$0xff] }
   0x7   :  { %v496_v25 = vpack.c.bf16 %v42_v23, %v41_v22  ;;  %v43_v28 = vld [vmem:[%s720_s2 + $0x40] sm:$0xff]  ;;  %v44_v29 = vld [vmem:[%s720_s2 + $0x48] sm:$0xff]  ;;  %v481_v30 = vpack.c.bf16 %v58_v27, %v57_v26  ;;  %v59_v32 = vld [vmem:[%s719_s3 + $0x50] sm:$0xff] }
   0x8   :  { %473 = vmatpush3.bf16.msra.mxu0 %v472_v12  ;;  %v499_v31 = vpack.c.bf16 %v44_v29, %v43_v28  ;;  %v60_v33 = vld [vmem:[%s719_s3 + $0x58] sm:$0xff]  ;;  %v45_v34 = vld [vmem:[%s720_s2 + $0x50] sm:$0xff]  ;;  %v227_v38 = vld [vmem:[%s721_s5] sm:$0xff] }
   0x9   :  { %491 = vmatpush3.bf16.msra.mxu1 %v490_v13  ;;  %474 = vmatprep.subr.bf16.mxu0 %v519_v0  ;;  %v46_v35 = vld [vmem:[%s720_s2 + $0x58] sm:$0xff]  ;;  %v484_v36 = vpack.c.bf16 %v60_v33, %v59_v32  ;;  %v228_v39 = vld [vmem:[%s721_s5 + $0x8] sm:$0xff]  ;;  %v61_v40 = vld [vmem:[%s719_s3 + $0x60] sm:$0xf] }
   0xa   :  { %492 = vmatprep.subr.bf16.mxu1 %v519_v0  ;;  %v502_v37 = vpack.c.bf16 %v46_v35, %v45_v34  ;;  %v47_v41 = vld [vmem:[%s720_s2 + $0x60] sm:$0xf]  ;;  %v505_v44 = vpack.c.bf16 %v228_v39, %v227_v38  ;;  %v229_v45 = vld [vmem:[%s721_s5 + $0x10] sm:$0xff]  ;;  %v230_v46 = vld [vmem:[%s721_s5 + $0x18] sm:$0xff] }
   0xb   :  { %v48_v42 = vld [vmem:[%s722_s1] sm:$0xff]  ;;  %v508_v47 = vpack.c.bf16 %v230_v46, %v229_v45  ;;  %v232_v49 = vld [vmem:[%s721_s5 + $0x28] sm:$0xff]  ;;  %v233_v51 = vld [vmem:[%s721_s5 + $0x30] sm:$0xff] }
   0xc   :  { %476 = vmatpush3.bf16.msra.mxu0 %v475_v18  ;;  %v34_v43 = vld [vmem:[%s723_s0] sm:$0xff]  ;;  %v234_v52 = vld [vmem:[%s721_s5 + $0x38] sm:$0xff] }
   0xd   :  { %494 = vmatpush3.bf16.msra.mxu1 %v493_v19  ;;  %477 = vmatprep.subr.bf16.mxu0 %v519_v0  ;;  %v231_v48 = vld [vmem:[%s721_s5 + $0x20] sm:$0xff]  ;;  %v514_v53 = vpack.c.bf16 %v234_v52, %v233_v51 }
   0xe   :  { %495 = vmatprep.subr.bf16.mxu1 %v519_v0  ;;  %v511_v50 = vpack.c.bf16 %v232_v49, %v231_v48  ;;  %v349_v56 = vld [vmem:[%s724_s4] ss:$0 sm:$0xff] }
   0xf   :  { %v352_v5 = vld [vmem:[%s727_s7] ss:$0 sm:$0xff] }
  0x10   :  { %479 = vmatpush3.bf16.msra.mxu0 %v478_v24  ;;  %v353_v9 = vld [vmem:[#allocation2] ss:$0 sm:$0xff] }
  0x11   :  { %497 = vmatpush3.bf16.msra.mxu1 %v496_v25  ;;  %480 = vmatprep.subr.bf16.mxu0 %v519_v0 }
  0x12   :  { %498 = vmatprep.subr.bf16.mxu1 %v519_v0 }
  0x14   :  { %482 = vmatpush3.bf16.msra.mxu0 %v481_v30 }
  0x15   :  { %500 = vmatpush3.bf16.msra.mxu1 %v499_v31  ;;  %483 = vmatprep.subr.bf16.mxu0 %v519_v0 }
  0x16   :  { %501 = vmatprep.subr.bf16.mxu1 %v519_v0 }
  0x18   :  { %485 = vmatpush3.bf16.msra.mxu0 %v484_v36 }
  0x19   :  { %503 = vmatpush3.bf16.msra.mxu1 %v502_v37  ;;  %415 = vmatprep.subr.mxu0 %v521_v8 }
  0x1a   :  { %444 = vmatprep.subr.mxu1 %v521_v8 }
  0x1c   :  { %416 = vmatpush3.msk.msra.mxu0 %vm66_vm1, %v61_v40 }
  0x1d   :  { %445 = vmatpush3.msk.msra.mxu1 %vm66_vm1, %v47_v41  ;;  %418 = vmatmul.mubr.msk.f32.vlgmr.msra.gmra.mrb[0].mxu0 %vm62_vm2, %v48_v42 }
  0x1e   :  { %447 = vmatmul.mubr.msk.f32.vlgmr.msra.gmra.mrb[0].mxu1 %vm62_vm2, %v34_v43  ;;  %504 = vmatprep.subr.bf16.mxu0 %v519_v0 }
  0x1f   :  { %506 = vmatpush3.bf16.msra.mxu0 %v505_v44  ;;  %465 = vmatprep.mubr.msk.f32.mxu0 %vm520_vm0, %v521_v8 }
  0x20   :  { %507 = vmatprep.subr.bf16.mxu0 %v519_v0 }
  0x23   :  { %509 = vmatpush3.bf16.msra.mxu0 %v508_v47 }
  0x24   :  { %510 = vmatprep.subr.bf16.mxu0 %v519_v0 }
  0x27   :  { %512 = vmatpush3.bf16.msra.mxu0 %v511_v50 }
  0x28   :  { %513 = vmatprep.subr.bf16.mxu0 %v519_v0  ;;  %v350_v0 = vld [vmem:[%s726_s6] ss:$0 sm:$0xff] }
  0x2b   :  { %515 = vmatpush3.bf16.msra.mxu0 %v514_v53 }
  0xf0   :  { %v136_v54 = vpop.f32.mrb[0].mxu0 }
  0xf1   :  { %v212_v55 = vpop.f32.mrb[0].mxu1  ;;  %v419_v57 = vpop.f32.mrb[1].mxu0 }
  0xf2   :  { %v213_v58 = vadd.f32 %v212_v55, %v136_v54  ;;  %v448_v59 = vpop.f32.mrb[1].mxu1 }
  0xf4   :  { %v223_v60 = vadd.f32 %v349_v56, %v213_v58 }
  0xf6   :  { %vm224_vm3 = vcmp.gt.f32.partialorder %v223_v60, 0.0  ;;  %v225_v61 = vmul.f32 0.01, %v223_v60 }
  0xf8   :  { %v226_v62 = vsel %vm224_vm3, %v223_v60, %v225_v61 }
  0xf9   :  { %466 = vmatmul.mubr.msk.f32.vlgmr.msra.gmra.mrb[2].mxu0 %vm242_vm4, %v226_v62 }
 0x1cc   :  { %v312_v1 = vpop.f32.mrb[2].mxu0 }
 0x1cd   :  { %v313_v2 = vadd.f32 %v350_v0, %v312_v1  ;;  %v467_v3 = vpop.f32.mrb[3].mxu0 }
 0x1cf   :  { %v317_v4 = vmul.f32 0.01, %v313_v2  ;;  %vm316_vm5 = vcmp.gt.f32.partialorder %v313_v2, 0.0 }
 0x1d1   :  { %v318_v6 = vsel %vm316_vm5, %v313_v2, %v317_v4 }
 0x1d2   :  { %v326_v7 = vmul.f32 %v352_v5, %v318_v6 }
 0x1d4   :  { %v328_v8 = vsel %vm327_vm6, %v326_v7, 0.0 }
 0x1d5   :  { %329 = vadd.xlane.f32.xlu0 %v328_v8 }
 0x262   :  { %v330_v10 = vpop.xlane.xlu0 %329 }
 0x263   :  { %v338_v11 = vadd.f32 %v353_v9, %v330_v10 }
 0x265   :  { %340 = vst.msk [vmem:[%s728_s9] sm:$0xff] %vm339_vm7, %v338_v11 }

</bundles_post_ra>
